<compile_context>
chip_gen: v7x
topology: tpu7x:2x2x1
jax: 0.10.0
libtpu: 0.0.40
codegen_flags: <defaults>
</compile_context>

<pallas_src>
import math
import jax
import jax.numpy as jnp
from jax.experimental import pallas as pl
from jax.experimental.pallas import tpu as pltpu

ALPHA = 0.2  # LeakyReLU negative slope (PyTorch module's `alpha`)


def gat_kernel(h_ref, f_ref, g_ref, keep_ref, out_ref, att_ref):
    """One (batch-block, query-tile) grid step.

    h_ref    (BB, N, Fout)   mxu dtype -- precomputed h = x @ W, full node set
    f_ref    (BB, TQ, 1)     f32  query-side logits  h @ a1, this tile
    g_ref    (BB, 1, N)      f32  key-side logits    h @ a2, row/lane-major
    keep_ref (BB, TQ, N)     int8 1 where adj < 1 (reference semantics)
    out_ref  (BB, TQ, Fout)  f32
    att_ref  (BB, TQ, N)     f32 or bf16
    """
    mxu_dt = h_ref.dtype
    bb = h_ref.shape[0]

    # Static unroll over the (small, capped) batch block: every matmul stays a
    # plain 2-D MXU dot, which Mosaic lowers cleanly.
    for i in range(bb):
        # e[q, j] = leakyrelu(f_q + g_j); f/g are precomputed lane-friendly
        # vectors -> no (N,1)-output MXU pass, no XLU transpose here.
        s = f_ref[i] + g_ref[i]                                   # (TQ, N) f32
        e = jnp.where(s > 0, s, ALPHA * s)                        # LeakyReLU

        # Reference keeps scores where adj < 1 (it attends to non-edges; that
        # is exactly what the PyTorch module does). Scalar fill, no full_like.
        scores = jnp.where(keep_ref[i] != 0, e, -9.0e15)          # (TQ, N) f32

        # Numerically stable softmax over j, all element-wise math in f32.
        m = jnp.max(scores, axis=-1, keepdims=True)
        p = jnp.exp(scores - m)                                   # unnormalized
        denom = jnp.sum(p, axis=-1, keepdims=True)
        r = pl.reciprocal(denom, approx=True)                     # EUP vrcp (free slot)
        r = r * (2.0 - denom * r)                                 # 1 Newton step -> ~f32 exact

        # Deferred normalization: start the MXU on the unnormalized p, scale
        # the (TQ, Fout) result afterwards; att = p * r runs on the VPU and
        # hides under the matmul.
        hp = jnp.dot(p.astype(mxu_dt), h_ref[i],
                     preferred_element_type=jnp.float32)          # (TQ, Fout) f32
        att_ref[i] = (p * r).astype(att_ref.dtype)                # (TQ, N)

        hp = hp * r                                               # normalize
        # ELU(alpha=1); exp only on the non-positive branch (no inf garbage).
        out = jnp.where(hp > 0, hp, jnp.exp(jnp.minimum(hp, 0.0)) - 1.0)
        out_ref[i] = out.astype(out_ref.dtype)


def _vmem_capacity_bytes():
    try:
        return int(pltpu.get_tpu_info().vmem_capacity_bytes)
    except Exception:
        return 128 * 1024 * 1024   # conservative fallback (v5e/v6e capacity)


def _pick_query_tile(n, requested, vmem_bytes):
    if requested is not None:
        assert n % requested == 0, "query_tile must divide N"
        return requested
    # v7x (64 MiB VMEM/TC): cap at 256; v5e/v6e (128 MiB) can take 512.
    cap = 256 if vmem_bytes <= 64 * 1024 * 1024 else 512
    if n <= cap:
        return n
    for cand in (512, 256, 128, 64, 32):
        if cand <= cap and n % cand == 0:
            return cand
    return n


def gat_forward(x, adj, W, a, *, query_tile=None, batch_block=None,
                mxu_dtype=jnp.bfloat16, att_dtype=jnp.float32):
    B, N, Fin = x.shape
    Fout = W.shape[1]
    a1, a2 = a[:Fout], a[Fout:]                  # (Fout, 1) each

    # Precompute h = x @ W ONCE (f32), reuse it for the attention projections:
    #   f_i = h_i @ a1 (query side),  g_j = h_j @ a2 (key side, lane-major).
    h = jnp.einsum("bnf,fo->bno", x, W)          # (B, N, Fout) f32
    f = jnp.einsum("bno,oc->bnc", h, a1)         # (B, N, 1)    f32
    g = jnp.einsum("bno,oc->bcn", h, a2)         # (B, 1, N)    f32, lane-major keys
    h_m = h.astype(mxu_dtype)                    # MXU operand for att @ h

    # int8 keep-mask with the module's exact semantics (keep where adj < 1).
    keep = (adj < 1.0).astype(jnp.int8)          # (B, N, N)
    # TODO(synk): for real pipelines store the adjacency as a packed bitmask
    # upstream so the f32 adj never has to be read at all.

    vmem_bytes = _vmem_capacity_bytes()
    tq = _pick_query_tile(N, query_tile, vmem_bytes)

    if batch_block is None:
        # Fold a few small-N batches per step, but cap the static unroll so
        # code size / vreg pressure stay bounded and the grid stays long.
        batch_block = min(B, 4) if N <= 128 else 1
        while B % batch_block != 0:
            batch_block -= 1
    assert B % batch_block == 0
    bb = batch_block

    # Batch outer, query-tile inner: h/g blocks (index depends only on b)
    # stay resident across the whole q sweep instead of re-DMA'ing per step.
    grid = (B // bb, N // tq)

    out_shape = (
        jax.ShapeDtypeStruct((B, N, Fout), jnp.float32),
        jax.ShapeDtypeStruct((B, N, N), att_dtype),
    )

    itemsize_m = jnp.dtype(mxu_dtype).itemsize
    itemsize_att = jnp.dtype(att_dtype).itemsize
    cost = pl.CostEstimate(
        flops=2 * B * N * N * Fout,              # att @ h (dominant MXU pass)
        transcendentals=B * N * N,               # exp over the score matrix
        bytes_accessed=(B * N * Fout * itemsize_m        # h
                        + 2 * B * N * 4                  # f, g
                        + B * N * N                      # keep (int8)
                        + B * N * Fout * 4               # out
                        + B * N * N * itemsize_att),     # att
    )

    return pl.pallas_call(
        gat_kernel,
        out_shape=out_shape,
        grid_spec=pltpu.PrefetchScalarGridSpec(
            num_scalar_prefetch=0,
            grid=grid,
            in_specs=[
                pl.BlockSpec((bb, N, Fout), lambda b, q: (b, 0, 0)),   # h (all nodes, resident)
                pl.BlockSpec((bb, tq, 1), lambda b, q: (b, q, 0)),     # f (query tile)
                pl.BlockSpec((bb, 1, N), lambda b, q: (b, 0, 0)),      # g (all keys, resident)
                pl.BlockSpec((bb, tq, N), lambda b, q: (b, q, 0)),     # int8 keep-mask tile
            ],
            out_specs=[
                pl.BlockSpec((bb, tq, Fout), lambda b, q: (b, q, 0)),  # elu(h')
                pl.BlockSpec((bb, tq, N), lambda b, q: (b, q, 0)),     # attention
            ],
        ),
        compiler_params=pltpu.CompilerParams(
            dimension_semantics=("parallel", "parallel"),
            # Chip-aware scoped-VMEM budget: ~48 MiB on v7x (64 MiB/TC),
            # ~96 MiB on v5e/v6e (128 MiB) -- headroom for double-buffers.
            vmem_limit_bytes=(vmem_bytes * 3) // 4,
        ),
        cost_estimate=cost,
    )(h_m, f, g, keep)


def xavier_uniform(key, shape, gain):
    fan_in, fan_out = shape[0], shape[1]
    bound = gain * math.sqrt(6.0 / (fan_in + fan_out))
    return jax.random.uniform(key, shape, jnp.float32, minval=-bound, maxval=bound)


def reference(x, adj, W, a):
    # Pure-JAX reference mirroring the PyTorch forward (f32 everywhere).
    h = jnp.einsum("bnf,fc->bnc", x, W)
    B, N, C = h.shape
    a1, a2 = a[:C, 0], a[C:, 0]
    s = (jnp.einsum("bic,c->bi", h, a1)[:, :, None]
         + jnp.einsum("bjc,c->bj", h, a2)[:, None, :])
    e = jnp.where(s > 0, s, ALPHA * s)
    att = jnp.where(adj < 1.0, e, jnp.full_like(e, -9.0e15))
    att = jax.nn.softmax(att, axis=2)
    h_prime = jnp.einsum("bij,bjc->bic", att, h)
    return jnp.where(h_prime > 0, h_prime, jnp.exp(h_prime) - 1.0), att


if __name__ == "__main__":
    key = jax.random.PRNGKey(0)
    k_x, k_adj, k_w, k_a = jax.random.split(key, 4)

    B, N, F_IN, F_OUT = 2, 8, 16, 32

    x = jax.random.normal(k_x, (B, N, F_IN), jnp.float32)
    adj = (jax.random.uniform(k_adj, (B, N, N)) > 0.5).astype(jnp.float32)

    gain = 1.414
    W = xavier_uniform(k_w, (F_IN, F_OUT), gain)
    a = xavier_uniform(k_a, (2 * F_OUT, 1), gain)

    ref_h, ref_att = reference(x, adj, W, a)

    # Exact path: f32 MXU operands.
    h32, att32 = gat_forward(x, adj, W, a, mxu_dtype=jnp.float32)
    jax.block_until_ready((h32, att32))
    assert jnp.allclose(h32, ref_h, atol=1e-4, rtol=1e-4)
    assert jnp.allclose(att32, ref_att, atol=1e-4, rtol=1e-4)

    # Default fast path: bf16 MXU operand for att@h, f32 softmax / element-wise.
    h16, att16 = gat_forward(x, adj, W, a)
    jax.block_until_ready((h16, att16))
    # Attention is computed entirely in f32 (f/g are f32) -> tight tolerance.
    assert jnp.allclose(att16, ref_att, atol=1e-3, rtol=1e-3)
    # h' goes through bf16 p/h operands -> bf16-level tolerance.
    assert jnp.allclose(h16, ref_h, atol=1e-1, rtol=1e-1)

    # Optional mem-bound path: bf16 attention writeback (halves the (B,N,N)
    # HBM store traffic); loose tolerance since the stored att is bf16.
    hb, attb = gat_forward(x, adj, W, a, att_dtype=jnp.bfloat16)
    jax.block_until_ready((hb, attb))
    assert jnp.allclose(attb.astype(jnp.float32), ref_att, atol=1e-2, rtol=1e-2)

    print("KERNEL_OK")
</pallas_src>

<mosaic_0001>
module attributes {stable_mosaic.version = 11 : i64} {
  func.func @gat_kernel(%arg0: i32, %arg1: i32, %arg2: memref<2x8x32xf32, #tpu.memory_space<vmem>>, %arg3: memref<2x8x1xf32, #tpu.memory_space<vmem>>, %arg4: memref<2x1x8xf32, #tpu.memory_space<vmem>>, %arg5: memref<2x8x8xi8, #tpu.memory_space<vmem>>, %arg6: memref<2x8x32xf32, #tpu.memory_space<vmem>>, %arg7: memref<2x8x8xf32, #tpu.memory_space<vmem>>) attributes {dimension_semantics = [#tpu.dimension_semantics<parallel>, #tpu.dimension_semantics<parallel>], iteration_bounds = array<i64: 1, 1>, scalar_prefetch = 0 : i64, scratch_operands = 0 : i64, tpu.core_type = #tpu.core_type<tc>, window_params = [{transform_indices = @transform_0, window_bounds = array<i64: 2, 8, 32>}, {transform_indices = @transform_1, window_bounds = array<i64: 2, 8, 1>}, {transform_indices = @transform_2, window_bounds = array<i64: 2, 1, 8>}, {transform_indices = @transform_3, window_bounds = array<i64: 2, 8, 8>}, {transform_indices = @transform_4, window_bounds = array<i64: 2, 8, 32>}, {transform_indices = @transform_5, window_bounds = array<i64: 2, 8, 8>}]} {
    %c0 = arith.constant 0 : index
    %c0_0 = arith.constant 0 : index
    %c0_1 = arith.constant 0 : index
    %0 = vector.load %arg3[%c0, %c0_0, %c0_1] : memref<2x8x1xf32, #tpu.memory_space<vmem>>, vector<1x8x1xf32>
    %1 = vector.shape_cast %0 : vector<1x8x1xf32> to vector<8x1xf32>
    %c0_2 = arith.constant 0 : index
    %c0_3 = arith.constant 0 : index
    %c0_4 = arith.constant 0 : index
    %2 = vector.load %arg4[%c0_2, %c0_3, %c0_4] : memref<2x1x8xf32, #tpu.memory_space<vmem>>, vector<1x1x8xf32>
    %3 = vector.shape_cast %2 : vector<1x1x8xf32> to vector<1x8xf32>
    %4 = vector.broadcast %1 : vector<8x1xf32> to vector<8x8xf32>
    %5 = vector.broadcast %3 : vector<1x8xf32> to vector<8x8xf32>
    %6 = arith.addf %4, %5 : vector<8x8xf32>
    %cst = arith.constant 0.000000e+00 : f32
    %7 = vector.broadcast %cst : f32 to vector<8x8xf32>
    %8 = arith.cmpf ogt, %6, %7 : vector<8x8xf32>
    %cst_5 = arith.constant 2.000000e-01 : f32
    %9 = vector.broadcast %cst_5 : f32 to vector<8x8xf32>
    %10 = arith.mulf %9, %6 : vector<8x8xf32>
    %11 = arith.select %8, %6, %10 : vector<8x8xi1>, vector<8x8xf32>
    %c0_6 = arith.constant 0 : index
    %c0_7 = arith.constant 0 : index
    %c0_8 = arith.constant 0 : index
    %12 = vector.load %arg5[%c0_6, %c0_7, %c0_8] : memref<2x8x8xi8, #tpu.memory_space<vmem>>, vector<1x8x8xi8>
    %13 = vector.shape_cast %12 : vector<1x8x8xi8> to vector<8x8xi8>
    %c0_i8 = arith.constant 0 : i8
    %14 = vector.broadcast %c0_i8 : i8 to vector<8x8xi8>
    %15 = arith.cmpi ne, %13, %14 : vector<8x8xi8>
    %cst_9 = arith.constant -9.000000e+15 : f32
    %16 = vector.broadcast %cst_9 : f32 to vector<8x8xf32>
    %17 = arith.select %15, %11, %16 : vector<8x8xi1>, vector<8x8xf32>
    %cst_10 = arith.constant dense<0xFF800000> : vector<8xf32>
    %18 = vector.multi_reduction <maximumf>, %17, %cst_10 [1] : vector<8x8xf32> to vector<8xf32>
    %19 = vector.shape_cast %18 : vector<8xf32> to vector<8x1xf32>
    %20 = vector.broadcast %19 : vector<8x1xf32> to vector<8x8xf32>
    %21 = arith.subf %17, %20 : vector<8x8xf32>
    %22 = math.exp %21 : vector<8x8xf32>
    %cst_11 = arith.constant dense<0.000000e+00> : vector<8xf32>
    %23 = vector.multi_reduction <add>, %22, %cst_11 [1] : vector<8x8xf32> to vector<8xf32>
    %24 = vector.shape_cast %23 : vector<8xf32> to vector<8x1xf32>
    %25 = tpu.reciprocal %24 {approx = true} : vector<8x1xf32> -> vector<8x1xf32>
    %26 = arith.mulf %24, %25 : vector<8x1xf32>
    %cst_12 = arith.constant 2.000000e+00 : f32
    %27 = vector.broadcast %cst_12 : f32 to vector<8x1xf32>
    %28 = arith.subf %27, %26 : vector<8x1xf32>
    %29 = arith.mulf %25, %28 : vector<8x1xf32>
    %c0_13 = arith.constant 0 : index
    %c0_14 = arith.constant 0 : index
    %c0_15 = arith.constant 0 : index
    %30 = vector.load %arg2[%c0_13, %c0_14, %c0_15] : memref<2x8x32xf32, #tpu.memory_space<vmem>>, vector<1x8x32xf32>
    %31 = vector.shape_cast %30 : vector<1x8x32xf32> to vector<8x32xf32>
    %cst_16 = arith.constant dense<0.000000e+00> : vector<8x32xf32>
    %32 = tpu.matmul %22, %31, %cst_16 {dimension_numbers = #tpu.dot_dimension_numbers<[1], [0], [0], [1], [0, 0, 1, 1], [], []>} : vector<8x8xf32>, vector<8x32xf32>, vector<8x32xf32> -> vector<8x32xf32>
    %33 = vector.broadcast %29 : vector<8x1xf32> to vector<8x8xf32>
    %34 = arith.mulf %22, %33 : vector<8x8xf32>
    %c0_17 = arith.constant 0 : index
    %c0_18 = arith.constant 0 : index
    %c0_19 = arith.constant 0 : index
    %35 = vector.load %arg7[%c0_17, %c0_18, %c0_19] : memref<2x8x8xf32, #tpu.memory_space<vmem>>, vector<1x8x8xf32>
    %36 = vector.shape_cast %35 : vector<1x8x8xf32> to vector<8x8xf32>
    %37 = vector.shape_cast %34 : vector<8x8xf32> to vector<1x8x8xf32>
    tpu.vector_store %arg7[%c0_17, %c0_18, %c0_19], %37 {strides = array<i32>} : memref<2x8x8xf32, #tpu.memory_space<vmem>>, vector<1x8x8xf32>,
    %38 = vector.broadcast %29 : vector<8x1xf32> to vector<8x32xf32>
    %39 = arith.mulf %32, %38 : vector<8x32xf32>
    %cst_20 = arith.constant 0.000000e+00 : f32
    %40 = vector.broadcast %cst_20 : f32 to vector<8x32xf32>
    %41 = arith.cmpf ogt, %39, %40 : vector<8x32xf32>
    %cst_21 = arith.constant 0.000000e+00 : f32
    %42 = vector.broadcast %cst_21 : f32 to vector<8x32xf32>
    %43 = arith.minimumf %39, %42 : vector<8x32xf32>
    %44 = math.exp %43 : vector<8x32xf32>
    %cst_22 = arith.constant 1.000000e+00 : f32
    %45 = vector.broadcast %cst_22 : f32 to vector<8x32xf32>
    %46 = arith.subf %44, %45 : vector<8x32xf32>
    %47 = arith.select %41, %39, %46 : vector<8x32xi1>, vector<8x32xf32>
    %c0_23 = arith.constant 0 : index
    %c0_24 = arith.constant 0 : index
    %c0_25 = arith.constant 0 : index
    %48 = vector.load %arg6[%c0_23, %c0_24, %c0_25] : memref<2x8x32xf32, #tpu.memory_space<vmem>>, vector<1x8x32xf32>
    %49 = vector.shape_cast %48 : vector<1x8x32xf32> to vector<8x32xf32>
    %50 = vector.shape_cast %47 : vector<8x32xf32> to vector<1x8x32xf32>
    tpu.vector_store %arg6[%c0_23, %c0_24, %c0_25], %50 {strides = array<i32>} : memref<2x8x32xf32, #tpu.memory_space<vmem>>, vector<1x8x32xf32>,
    %c1 = arith.constant 1 : index
    %c0_26 = arith.constant 0 : index
    %c0_27 = arith.constant 0 : index
    %51 = vector.load %arg3[%c1, %c0_26, %c0_27] : memref<2x8x1xf32, #tpu.memory_space<vmem>>, vector<1x8x1xf32>
    %52 = vector.shape_cast %51 : vector<1x8x1xf32> to vector<8x1xf32>
    %c1_28 = arith.constant 1 : index
    %c0_29 = arith.constant 0 : index
    %c0_30 = arith.constant 0 : index
    %53 = vector.load %arg4[%c1_28, %c0_29, %c0_30] : memref<2x1x8xf32, #tpu.memory_space<vmem>>, vector<1x1x8xf32>
    %54 = vector.shape_cast %53 : vector<1x1x8xf32> to vector<1x8xf32>
    %55 = vector.broadcast %52 : vector<8x1xf32> to vector<8x8xf32>
    %56 = vector.broadcast %54 : vector<1x8xf32> to vector<8x8xf32>
    %57 = arith.addf %55, %56 : vector<8x8xf32>
    %cst_31 = arith.constant 0.000000e+00 : f32
    %58 = vector.broadcast %cst_31 : f32 to vector<8x8xf32>
    %59 = arith.cmpf ogt, %57, %58 : vector<8x8xf32>
    %cst_32 = arith.constant 2.000000e-01 : f32
    %60 = vector.broadcast %cst_32 : f32 to vector<8x8xf32>
    %61 = arith.mulf %60, %57 : vector<8x8xf32>
    %62 = arith.select %59, %57, %61 : vector<8x8xi1>, vector<8x8xf32>
    %c1_33 = arith.constant 1 : index
    %c0_34 = arith.constant 0 : index
    %c0_35 = arith.constant 0 : index
    %63 = vector.load %arg5[%c1_33, %c0_34, %c0_35] : memref<2x8x8xi8, #tpu.memory_space<vmem>>, vector<1x8x8xi8>
    %64 = vector.shape_cast %63 : vector<1x8x8xi8> to vector<8x8xi8>
    %c0_i8_36 = arith.constant 0 : i8
    %65 = vector.broadcast %c0_i8_36 : i8 to vector<8x8xi8>
    %66 = arith.cmpi ne, %64, %65 : vector<8x8xi8>
    %cst_37 = arith.constant -9.000000e+15 : f32
    %67 = vector.broadcast %cst_37 : f32 to vector<8x8xf32>
    %68 = arith.select %66, %62, %67 : vector<8x8xi1>, vector<8x8xf32>
    %cst_38 = arith.constant dense<0xFF800000> : vector<8xf32>
    %69 = vector.multi_reduction <maximumf>, %68, %cst_38 [1] : vector<8x8xf32> to vector<8xf32>
    %70 = vector.shape_cast %69 : vector<8xf32> to vector<8x1xf32>
    %71 = vector.broadcast %70 : vector<8x1xf32> to vector<8x8xf32>
    %72 = arith.subf %68, %71 : vector<8x8xf32>
    %73 = math.exp %72 : vector<8x8xf32>
    %cst_39 = arith.constant dense<0.000000e+00> : vector<8xf32>
    %74 = vector.multi_reduction <add>, %73, %cst_39 [1] : vector<8x8xf32> to vector<8xf32>
    %75 = vector.shape_cast %74 : vector<8xf32> to vector<8x1xf32>
    %76 = tpu.reciprocal %75 {approx = true} : vector<8x1xf32> -> vector<8x1xf32>
    %77 = arith.mulf %75, %76 : vector<8x1xf32>
    %cst_40 = arith.constant 2.000000e+00 : f32
    %78 = vector.broadcast %cst_40 : f32 to vector<8x1xf32>
    %79 = arith.subf %78, %77 : vector<8x1xf32>
    %80 = arith.mulf %76, %79 : vector<8x1xf32>
    %c1_41 = arith.constant 1 : index
    %c0_42 = arith.constant 0 : index
    %c0_43 = arith.constant 0 : index
    %81 = vector.load %arg2[%c1_41, %c0_42, %c0_43] : memref<2x8x32xf32, #tpu.memory_space<vmem>>, vector<1x8x32xf32>
    %82 = vector.shape_cast %81 : vector<1x8x32xf32> to vector<8x32xf32>
    %cst_44 = arith.constant dense<0.000000e+00> : vector<8x32xf32>
    %83 = tpu.matmul %73, %82, %cst_44 {dimension_numbers = #tpu.dot_dimension_numbers<[1], [0], [0], [1], [0, 0, 1, 1], [], []>} : vector<8x8xf32>, vector<8x32xf32>, vector<8x32xf32> -> vector<8x32xf32>
    %84 = vector.broadcast %80 : vector<8x1xf32> to vector<8x8xf32>
    %85 = arith.mulf %73, %84 : vector<8x8xf32>
    %c1_45 = arith.constant 1 : index
    %c0_46 = arith.constant 0 : index
    %c0_47 = arith.constant 0 : index
    %86 = vector.load %arg7[%c1_45, %c0_46, %c0_47] : memref<2x8x8xf32, #tpu.memory_space<vmem>>, vector<1x8x8xf32>
    %87 = vector.shape_cast %86 : vector<1x8x8xf32> to vector<8x8xf32>
    %88 = vector.shape_cast %85 : vector<8x8xf32> to vector<1x8x8xf32>
    tpu.vector_store %arg7[%c1_45, %c0_46, %c0_47], %88 {strides = array<i32>} : memref<2x8x8xf32, #tpu.memory_space<vmem>>, vector<1x8x8xf32>,
    %89 = vector.broadcast %80 : vector<8x1xf32> to vector<8x32xf32>
    %90 = arith.mulf %83, %89 : vector<8x32xf32>
    %cst_48 = arith.constant 0.000000e+00 : f32
    %91 = vector.broadcast %cst_48 : f32 to vector<8x32xf32>
    %92 = arith.cmpf ogt, %90, %91 : vector<8x32xf32>
    %cst_49 = arith.constant 0.000000e+00 : f32
    %93 = vector.broadcast %cst_49 : f32 to vector<8x32xf32>
    %94 = arith.minimumf %90, %93 : vector<8x32xf32>
    %95 = math.exp %94 : vector<8x32xf32>
    %cst_50 = arith.constant 1.000000e+00 : f32
    %96 = vector.broadcast %cst_50 : f32 to vector<8x32xf32>
    %97 = arith.subf %95, %96 : vector<8x32xf32>
    %98 = arith.select %92, %90, %97 : vector<8x32xi1>, vector<8x32xf32>
    %c1_51 = arith.constant 1 : index
    %c0_52 = arith.constant 0 : index
    %c0_53 = arith.constant 0 : index
    %99 = vector.load %arg6[%c1_51, %c0_52, %c0_53] : memref<2x8x32xf32, #tpu.memory_space<vmem>>, vector<1x8x32xf32>
    %100 = vector.shape_cast %99 : vector<1x8x32xf32> to vector<8x32xf32>
    %101 = vector.shape_cast %98 : vector<8x32xf32> to vector<1x8x32xf32>
    tpu.vector_store %arg6[%c1_51, %c0_52, %c0_53], %101 {strides = array<i32>} : memref<2x8x32xf32, #tpu.memory_space<vmem>>, vector<1x8x32xf32>,
    return
  }
  func.func @transform_0(%arg0: i32, %arg1: i32) -> (i32, i32, i32) {
    %c0_i32 = arith.constant 0 : i32
    %c0_i32_0 = arith.constant 0 : i32
    %c0_i32_1 = arith.constant 0 : i32
    return %arg0, %c0_i32, %c0_i32_0 : i32, i32, i32
  }
  func.func @transform_1(%arg0: i32, %arg1: i32) -> (i32, i32, i32) {
    %c0_i32 = arith.constant 0 : i32
    %c0_i32_0 = arith.constant 0 : i32
    return %arg0, %arg1, %c0_i32 : i32, i32, i32
  }
  func.func @transform_2(%arg0: i32, %arg1: i32) -> (i32, i32, i32) {
    %c0_i32 = arith.constant 0 : i32
    %c0_i32_0 = arith.constant 0 : i32
    %c0_i32_1 = arith.constant 0 : i32
    return %arg0, %c0_i32, %c0_i32_0 : i32, i32, i32
  }
  func.func @transform_3(%arg0: i32, %arg1: i32) -> (i32, i32, i32) {
    %c0_i32 = arith.constant 0 : i32
    %c0_i32_0 = arith.constant 0 : i32
    return %arg0, %arg1, %c0_i32 : i32, i32, i32
  }
  func.func @transform_4(%arg0: i32, %arg1: i32) -> (i32, i32, i32) {
    %c0_i32 = arith.constant 0 : i32
    %c0_i32_0 = arith.constant 0 : i32
    return %arg0, %arg1, %c0_i32 : i32, i32, i32
  }
  func.func @transform_5(%arg0: i32, %arg1: i32) -> (i32, i32, i32) {
    %c0_i32 = arith.constant 0 : i32
    %c0_i32_0 = arith.constant 0 : i32
    return %arg0, %arg1, %c0_i32 : i32, i32, i32
  }
}

</mosaic_0001>

<bundles_post_ra>
// kernel: tpu_custom_call.1
= control target key start
LH: loop header
LB: loop body
LE: loop exit
PB: predicated region body
PF: predicated region fallthrough
CT: control target
= control target key end

     0   :  { %11 = vsyncpa [#allocation3], 0  ;;  %s695_s0 = inlined_call_operand.hbm [shape: f32[2,8,32], index: 0, kind: input, shape index: {}]   ;;  %s696_s1 = inlined_call_operand.hbm [shape: f32[2,8,1], index: 1, kind: input, shape index: {}]   ;;  %s697_s2 = inlined_call_operand.hbm [shape: f32[2,1,8], index: 2, kind: input, shape index: {}]   ;;  %s698_s3 = inlined_call_operand.hbm [shape: s8[2,8,8], index: 3, kind: input, shape index: {}]   ;;  %s699_s4 = inlined_call_operand.hbm [shape: f32[2,8,32], index: 4, kind: output, shape index: {0}]   ;;  %s700_s5 = inlined_call_operand.hbm [shape: f32[2,8,8], index: 5, kind: output, shape index: {1}]  }
   0x1   :  { %12 = vsyncpa [#allocation6], 0 }
   0x2   :  { %13 = vsyncpa [#allocation9], 0 }
   0x3   :  { %14 = vsyncpa [#allocation4], 0 }
   0x4   :  { %15 = vsyncpa [#allocation12], 0  ;;  %s551_s18 = smov [#allocation5]   ;;  %s552_s20 = smov [#allocation2]  }
   0x5   :  { %s33_s19 = sshll.u32 %s551_s18, 4  ;;  %s21_s21 = sshll.u32 %s552_s20, 4  ;;  %s34_s19 = int_to_ptr.vmem [resolvable:$true] %s33_s19  ;;  %s596_s21 = int_to_ptr.vmem [resolvable:$true] %s21_s21 }
   0x6   :  { %s409_s24 = scalar_lea.hbm %s696_s1, 256 }
   0x7   :  { %p410_p0 = scmp.ne.s32.totalorder %s696_s1, %s409_s24  ;;  %p413_p1 = scmp.lt.u32.totalorder %s409_s24, %s696_s1 }
   0x9   :  { %p415_p2 = pnand %p413_p1, %p410_p0 }
   0xb   :  { %418 = shalt.err (!%p415_p2)
}
   0xc   :  { %s419_s29 = scalar_lea.vmem %s34_s19, 256  ;;  %p424_p4 = scmp.lt.s32.totalorder %s34_s19, %s34_s19 }
   0xd   :  { %p420_p3 = scmp.ne.s32.totalorder %s34_s19, %s419_s29  ;;  %p425_p5 = scmp.lt.s32.totalorder %s419_s29, %s419_s29 }
   0xf   :  { %p426_p6 = por %p425_p5, %p424_p4 }
  0x11   :  { %p427_p7 = pnand %p426_p6, %p420_p3 }
  0x13   :  { %430 = shalt.err (!%p427_p7)
}
  0x14   :  { %s553_s30 = smov 128   ;;  %s554_s6 = smov 8  }
  0x15   :  { %39 = dma.hbm_to_vmem [thread:$0]  %s696_s1, 256, %s34_s19, [#allocation6], %s553_s30, %s553_s30, %s554_s6  }
  0x16   :  { %s431_s11 = scalar_lea.hbm %s695_s0, 256 }
  0x17   :  { %p432_p8 = scmp.ne.s32.totalorder %s695_s0, %s431_s11  ;;  %p435_p9 = scmp.lt.u32.totalorder %s431_s11, %s695_s0 }
  0x19   :  { %p437_p10 = pnand %p435_p9, %p432_p8 }
  0x1b   :  { %440 = shalt.err (!%p437_p10)
}
  0x1c   :  { %s441_s16 = scalar_lea.vmem %s596_s21, 256  ;;  %p446_p12 = scmp.lt.s32.totalorder %s596_s21, %s596_s21 }
  0x1d   :  { %p442_p11 = scmp.ne.s32.totalorder %s596_s21, %s441_s16  ;;  %p447_p13 = scmp.lt.s32.totalorder %s441_s16, %s441_s16 }
  0x1f   :  { %p448_p0 = por %p447_p13, %p446_p12 }
  0x21   :  { %p449_p1 = pnand %p448_p0, %p442_p11 }
  0x23   :  { %452 = shalt.err (!%p449_p1)
}
  0x24   :  { %27 = dma.hbm_to_vmem [thread:$0]  %s695_s0, 256, %s596_s21, [#allocation3], %s553_s30, %s553_s30, %s554_s6  }
  0x25   :  { %s555_s18 = smov [#allocation7]   ;;  %s453_s23 = scalar_lea.hbm %s697_s2, 32 }
  0x26   :  { %s45_s19 = sshll.u32 %s555_s18, 4  ;;  %p454_p2 = scmp.ne.s32.totalorder %s697_s2, %s453_s23  ;;  %s46_s19 = int_to_ptr.vmem [resolvable:$true] %s45_s19 }
  0x27   :  { %p457_p3 = scmp.lt.u32.totalorder %s453_s23, %s697_s2 }
  0x29   :  { %p459_p4 = pnand %p457_p3, %p454_p2 }
  0x2b   :  { %462 = shalt.err (!%p459_p4)
}
  0x2c   :  { %s463_s28 = scalar_lea.vmem %s46_s19, 32  ;;  %p468_p6 = scmp.lt.s32.totalorder %s46_s19, %s46_s19 }
  0x2d   :  { %p464_p5 = scmp.ne.s32.totalorder %s46_s19, %s463_s28  ;;  %p469_p7 = scmp.lt.s32.totalorder %s463_s28, %s463_s28 }
  0x2f   :  { %p470_p8 = por %p469_p7, %p468_p6 }
  0x31   :  { %p471_p9 = pnand %p470_p8, %p464_p5 }
  0x33   :  { %474 = shalt.err (!%p471_p9)
}
  0x34   :  { %s556_s0 = smov 16   ;;  %s557_s21 = smov 1  }
  0x35   :  { %51 = dma.hbm_to_vmem [thread:$0]  %s697_s2, 32, %s46_s19, [#allocation6], %s556_s0, %s556_s0, %s557_s21  }
  0x36   :  { %s558_s8 = smov [#allocation8]   ;;  %s475_s12 = scalar_lea.hbm %s698_s3, 64 }
  0x37   :  { %s57_s9 = sshll.u32 %s558_s8, 4  ;;  %p476_p10 = scmp.ne.s32.totalorder %s698_s3, %s475_s12  ;;  %s58_s9 = int_to_ptr.vmem [resolvable:$true] %s57_s9 }
  0x38   :  { %p479_p11 = scmp.lt.u32.totalorder %s475_s12, %s698_s3 }
  0x3a   :  { %p481_p12 = pnand %p479_p11, %p476_p10 }
  0x3c   :  { %484 = shalt.err (!%p481_p12)
}
  0x3d   :  { %s485_s1 = scalar_lea.vmem %s58_s9, 64  ;;  %p490_p0 = scmp.lt.s32.totalorder %s58_s9, %s58_s9 }
  0x3e   :  { %p486_p13 = scmp.ne.s32.totalorder %s58_s9, %s485_s1  ;;  %p491_p1 = scmp.lt.s32.totalorder %s485_s1, %s485_s1 }
  0x40   :  { %p492_p2 = por %p491_p1, %p490_p0 }
  0x42   :  { %p493_p3 = pnand %p492_p2, %p486_p13 }
  0x44   :  { %496 = shalt.err (!%p493_p3)
}
  0x45   :  { %s559_s2 = smov 32   ;;  %s560_s17 = smov 2  }
  0x46   :  { %63 = dma.hbm_to_vmem [thread:$0]  %s698_s3, 64, %s58_s9, [#allocation9], %s559_s2, %s559_s2, %s560_s17  }
  0x47   :  { %541 = dma.done.wait [#allocation3], 256  }
  0x48   :  { %542 = vsyncadd [#allocation3], 4294967040 }
  0x49   :  { %543 = dma.done.wait [#allocation6], 288  }
  0x4a   :  { %544 = vsyncadd [#allocation6], 4294967008 }
  0x4b   :  { %545 = dma.done.wait [#allocation9], 64  }
  0x4c   :  { %546 = vsyncadd [#allocation9], 4294967232  ;;  %v561_v0 = vmov 0   ;;  %v78_v1 = vld [vmem:[#allocation5] sm:$0xff]  ;;  %v201_v2 = vld [vmem:[#allocation5 + $0x8] sm:$0xff]  ;;  %vm101_vm4 = vcmask 64512  }
  0x4d   :  { %396 = vset.pattern.permute.xlu0 %v561_v0  ;;  %v95_v3 = vld [vmem:[#allocation8] sm:$0x3]  ;;  %v220_v4 = vld [vmem:[#allocation8 + $0x2] sm:$0x3]  ;;  %v361_v6 = vld [vmem:[#allocation7] ss:$0 sm:$0xff] }
  0x4e   :  { %82 = vperm.xlu0 %396, %v78_v1   ;;  %vm96_vm0 = vnez %v95_v3  ;;  %vm221_vm1 = vnez %v220_v4  ;;  %v364_v11 = vld [vmem:[#allocation7 + $0x1] ss:$0 sm:$0xff]  ;;  %v562_v24 = vmov 0.0   ;;  %vm563_vm7 = vmmov 0   ;;  %v240_v25 = vld [vmem:[#allocation2 + $0x8] sm:$0xff]  ;;  %s564_s3 = smov [#allocation11]  }
  0x4f   :  { %v97_v5 = vsel %vm96_vm0, 16843009, %v561_v0  ;;  %v222_v9 = vsel %vm221_vm1, 16843009, %v561_v0  ;;  %v115_v23 = vld [vmem:[#allocation2] sm:$0xff]  ;;  %371 = vmatprep.subr.mxu0 %v562_v24  ;;  %373 = vmatprep.mubr.msk.f32.mxu0 %vm563_vm7, %v562_v24  ;;  %s343_s20 = sshll.u32 %s564_s3, 4  ;;  %s344_s20 = int_to_ptr.vmem [resolvable:$true] %s343_s20 }
  0x50   :  { %v98_v7 = vunpack.c.0.s8 %v97_v5  ;;  %v223_v13 = vunpack.c.0.s8 %v222_v9  ;;  %372 = vmatpush3.msra.mxu0 %v115_v23  ;;  %376 = vmatprep.subr.mxu1 %v562_v24  ;;  %s497_s22 = scalar_lea.vmem %s344_s20, 256  ;;  %p502_p5 = scmp.lt.s32.totalorder %s344_s20, %s344_s20 }
  0x51   :  { %378 = vmatprep.mubr.msk.f32.mxu1 %vm563_vm7, %v562_v24  ;;  %377 = vmatpush3.msra.mxu1 %v240_v25  ;;  %p498_p4 = scmp.ne.s32.totalorder %s344_s20, %s497_s22  ;;  %p503_p6 = scmp.lt.s32.totalorder %s497_s22, %s497_s22 }
  0x52   :  { %206 = vperm.xlu0 %396, %v201_v2   ;;  %vm99_vm3 = vcmp.ne.s32.totalorder %v98_v7, 0  ;;  %vm224_vm6 = vcmp.ne.s32.totalorder %v223_v13, 0 }
  0x53   :  { %p504_p7 = por %p503_p6, %p502_p5 }
  0x55   :  { %p505_p8 = pnand %p504_p7, %p498_p4 }
  0xcd   :  { %v83_v8 = vpop.permute.xlu0 %82 }
  0xce   :  { %v91_v10 = vadd.f32 %v361_v6, %v83_v8 }
  0xd0   :  { %v93_v12 = vmul.f32 0.2, %v91_v10  ;;  %vm92_vm2 = vcmp.gt.f32.partialorder %v91_v10, 0.0 }
  0xd1   :  { %v207_v14 = vpop.permute.xlu0 %206 }
  0xd2   :  { %v215_v15 = vadd.f32 %v364_v11, %v207_v14  ;;  %v94_v16 = vsel %vm92_vm2, %v91_v10, %v93_v12 }
  0xd3   :  { %v100_v17 = vsel %vm99_vm3, %v94_v16, -9e+15 }
  0xd4   :  { %v217_v18 = vmul.f32 0.2, %v215_v15  ;;  %v102_v19 = vsel %vm101_vm4, %v100_v17, -inf  ;;  %vm216_vm5 = vcmp.gt.f32.partialorder %v215_v15, 0.0 }
  0xd5   :  { %103 = vmax.xlane.f32.xlu1 %v102_v19 }
  0xd6   :  { %v218_v20 = vsel %vm216_vm5, %v215_v15, %v217_v18 }
  0xd7   :  { %v225_v21 = vsel %vm224_vm6, %v218_v20, -9e+15 }
  0xd8   :  { %v226_v22 = vsel %vm101_vm4, %v225_v21, -inf }
  0xd9   :  { %227 = vmax.xlane.f32.xlu1 %v226_v22 }
 0x162   :  { %v104_v26 = vpop.xlane.xlu1 %103 }
 0x163   :  { %v105_v27 = vsub.f32 %v100_v17, %v104_v26 }
 0x165   :  { %v106_v28 = vmul.f32 1.442695, %v105_v27 }
 0x166   :  { %v228_v29 = vpop.xlane.xlu1 %227 }
 0x167   :  { %397 = vpow2.f32 %v106_v28  ;;  %v229_v30 = vsub.f32 %v225_v21, %v228_v29 }
 0x169   :  { %v230_v31 = vmul.f32 1.442695, %v229_v30 }
 0x16b   :  { %399 = vpow2.f32 %v230_v31 }
 0x171   :  { %v398_v32 = vpop.eup %397 }
 0x172   :  { %374 = vmatmul.mubr.msk.f32.vlgmr.msra.gmra.mrb[0].mxu0 %vm101_vm4, %v398_v32  ;;  %v108_v33 = vsel %vm101_vm4, %v398_v32, 0.0 }
 0x173   :  { %109 = vadd.xlane.f32.xlu0 %v108_v33 }
 0x175   :  { %v400_v34 = vpop.eup %399 }
 0x176   :  { %379 = vmatmul.mubr.msk.f32.vlgmr.msra.gmra.mrb[0].mxu1 %vm101_vm4, %v400_v34  ;;  %v232_v35 = vsel %vm101_vm4, %v400_v34, 0.0 }
 0x177   :  { %233 = vadd.xlane.f32.xlu1 %v232_v35 }
 0x200   :  { %v110_v36 = vpop.xlane.xlu0 %109 }
 0x201   :  { %401 = vrcp.f32 %v110_v36 }
 0x204   :  { %v234_v37 = vpop.xlane.xlu1 %233 }
 0x205   :  { %403 = vrcp.f32 %v234_v37 }
 0x20b   :  { %v402_v38 = vpop.eup %401 }
 0x20c   :  { %v112_v39 = vmul.f32 %v402_v38, %v110_v36 }
 0x20e   :  { %v113_v40 = vsub.f32 2.0, %v112_v39 }
 0x20f   :  { %v404_v41 = vpop.eup %403 }
 0x210   :  { %v236_v42 = vmul.f32 %v404_v41, %v234_v37  ;;  %v114_v43 = vmul.f32 %v402_v38, %v113_v40 }
 0x212   :  { %v237_v44 = vsub.f32 2.0, %v236_v42  ;;  %v189_v45 = vmul.f32 %v398_v32, %v114_v43 }
 0x214   :  { %190 = vst.msk [vmem:[#allocation11] sm:$0xff] %vm101_vm4, %v189_v45  ;;  %v238_v46 = vmul.f32 %v404_v41, %v237_v44 }
 0x216   :  { %v314_v47 = vmul.f32 %v400_v34, %v238_v46 }
 0x218   :  { %316 = vst.msk [vmem:[#allocation11 + $0x8] sm:$0xff] %vm101_vm4, %v314_v47 }
 0x219   :  { %508 = shalt.err (!%p505_p8)
}
 0x21a   :  { %s509_s25 = scalar_lea.hbm %s700_s5, 256 }
 0x21b   :  { %p510_p9 = scmp.ne.s32.totalorder %s700_s5, %s509_s25  ;;  %p513_p10 = scmp.lt.u32.totalorder %s509_s25, %s700_s5 }
 0x21d   :  { %p515_p11 = pnand %p513_p10, %p510_p9 }
 0x21f   :  { %518 = shalt.err (!%p515_p11)
}
 0x220   :  { %349 = dma.vmem_to_hbm [thread:$0]  %s344_s20, 256, %s700_s5, [#allocation12], %s553_s30, %s553_s30, %s554_s6   ;;  %vm198_vm8 = vcmask 261120  }
 0x221   :  { %s565_s7 = smov [#allocation10]  }
 0x222   :  { %s331_s8 = sshll.u32 %s565_s7, 4  ;;  %s332_s8 = int_to_ptr.vmem [resolvable:$true] %s331_s8 }
 0x223   :  { %s519_s5 = scalar_lea.vmem %s332_s8, 256  ;;  %p524_p13 = scmp.lt.s32.totalorder %s332_s8, %s332_s8 }
 0x224   :  { %p520_p12 = scmp.ne.s32.totalorder %s332_s8, %s519_s5  ;;  %p525_p0 = scmp.lt.s32.totalorder %s519_s5, %s519_s5 }
 0x226   :  { %p526_p1 = por %p525_p0, %p524_p13 }
 0x228   :  { %p527_p2 = pnand %p526_p1, %p520_p12 }
 0x245   :  { %v185_v48 = vpop.f32.mrb[0].mxu0 }
 0x246   :  { %v191_v49 = vmul.f32 %v185_v48, %v114_v43  ;;  %v375_v50 = vpop.f32.mrb[1].mxu0 }
 0x248   :  { %v193_v51 = vmin.f32 %v191_v49, 0.0  ;;  %vm192_vm9 = vcmp.gt.f32.partialorder %v191_v49, 0.0 }
 0x249   :  { %v310_v52 = vpop.f32.mrb[0].mxu1 }
 0x24a   :  { %v194_v53 = vmul.f32 1.442695, %v193_v51  ;;  %v317_v54 = vmul.f32 %v310_v52, %v238_v46  ;;  %v380_v55 = vpop.f32.mrb[1].mxu1 }
 0x24c   :  { %405 = vpow2.f32 %v194_v53  ;;  %v319_v56 = vmin.f32 %v317_v54, 0.0  ;;  %vm318_vm10 = vcmp.gt.f32.partialorder %v317_v54, 0.0 }
 0x24e   :  { %v320_v57 = vmul.f32 1.442695, %v319_v56 }
 0x250   :  { %407 = vpow2.f32 %v320_v57 }
 0x256   :  { %v406_v58 = vpop.eup %405 }
 0x257   :  { %v363_v59 = vadd.f32 -1.0, %v406_v58 }
 0x259   :  { %v197_v60 = vsel %vm192_vm9, %v191_v49, %v363_v59 }
 0x25a   :  { %v408_v61 = vpop.eup %407  ;;  %199 = vst.msk [vmem:[#allocation10] sm:$0xff] %vm198_vm8, %v197_v60 }
 0x25b   :  { %v366_v62 = vadd.f32 -1.0, %v408_v61 }
 0x25d   :  { %v323_v63 = vsel %vm318_vm10, %v317_v54, %v366_v62 }
 0x25e   :  { %325 = vst.msk [vmem:[#allocation10 + $0x8] sm:$0xff] %vm198_vm8, %v323_v63 }
 0x25f   :  { %530 = shalt.err (!%p527_p2)
}
 0x260   :  { %s531_s11 = scalar_lea.hbm %s699_s4, 256 }
 0x261   :  { %p532_p3 = scmp.ne.s32.totalorder %s699_s4, %s531_s11  ;;  %p535_p4 = scmp.lt.u32.totalorder %s531_s11, %s699_s4 }
 0x263   :  { %p537_p5 = pnand %p535_p4, %p532_p3 }
 0x265   :  { %540 = shalt.err (!%p537_p5)
}
 0x266   :  { %337 = dma.vmem_to_hbm [thread:$0]  %s332_s8, 256, %s699_s4, [#allocation4], %s553_s30, %s553_s30, %s554_s6  }
 0x267   :  { %547 = dma.done.wait [#allocation4], 256  }
 0x268   :  { %548 = vsyncadd [#allocation4], 4294967040 }
 0x269   :  { %549 = dma.done.wait [#allocation12], 256  }
 0x26a   :  { %550 = vsyncadd [#allocation12], 4294967040 }
 0x26b   :  { %356 = vsyncpa [#allocation3], 1 }
 0x26c   :  { %357 = vsyncpa [#allocation6], 1 }
 0x26d   :  { %358 = vsyncpa [#allocation9], 1 }
 0x26e   :  { %359 = vsyncpa [#allocation4], 1 }
 0x26f   :  { %360 = vsyncpa [#allocation12], 1 }

</bundles_post_ra>
